<compile_context>
chip_gen: v5e
topology: v5e:2x2
jax: 0.10.0
libtpu: 0.0.40
codegen_flags: <defaults>
</compile_context>

<pallas_src>
import jax
import jax.numpy as jnp
import numpy as np
from jax.experimental import pallas as pl
from jax.experimental.pallas import tpu as pltpu

_MAX_TILE_PX = 256 * 1024   # per-step logits DMA is already multi-MiB here


def _tpu_vmem_capacity():
    try:
        return int(pltpu.get_tpu_info().vmem_capacity_bytes)
    except Exception:
        return 64 << 20      # conservative fallback: v7x physical VMEM


def _pick_tile(P, C, itemsize, budget_bytes):
    """Largest lane-dense pixel tile whose pipeline footprint fits `budget_bytes`.

    Footprint per pixel (worst-case sublane padding to 8 rows):
      logits  : 2 (double-buffer) * round_up(C,8) * itemsize
      targets : 2 (double-buffer) * 8 * 4   (int32)
      scratch : 2 (loss + weight accumulators, single-buffered) * 8 * 4  (f32)
    """
    c_pad = -(-C // 8) * 8
    per_px = 2 * c_pad * itemsize + 2 * 8 * 4 + 2 * 8 * 4
    t = budget_bytes // per_px
    t = max(128, min(int(t), _MAX_TILE_PX))
    t = (t // 128) * 128
    p_up = -(-P // 128) * 128
    return int(min(t, p_up)), int(per_px)


def _ce2d_kernel(w_ref, x_ref, t_ref, lsum_ref, wsum_ref, lacc_ref, wacc_ref):
    """One grid step processes a (C, TILE) lane-dense block of pixel logits.

    w_ref    : (C, 1)        f32 class weights (resident, single DMA)
    x_ref    : (1, C, TILE)  logits in native dtype (upcast in-kernel)
    t_ref    : (1, 1, TILE)  i32 raw targets in [0, C] (0 == ignore)
    lsum_ref : (1, 1, 128)   f32 per-(batch, split) weighted-NLL total (written once)
    wsum_ref : (1, 1, 128)   f32 per-(batch, split) weight total (written once)
    lacc_ref : (1, TILE)     f32 VMEM scratch — running per-pixel loss sums
    wacc_ref : (1, TILE)     f32 VMEM scratch — running per-pixel weight sums
    """
    p = pl.program_id(2)
    last = pl.num_programs(2) - 1

    @pl.when(p == 0)
    def _():
        lacc_ref[...] = jnp.zeros_like(lacc_ref)
        wacc_ref[...] = jnp.zeros_like(wacc_ref)

    x = x_ref[0].astype(jnp.float32)          # (C, TILE) — classes on sublanes
    t = t_ref[0]                              # (1, TILE)
    tm = t - 1                                # shifted class index
    valid = tm >= 0                           # class 0 (and any padded tail) -> ignored
    safe = jnp.where(valid, tm, 0)            # (1, TILE)

    # one-hot mask over the class (sublane) axis — no dynamic gather on TPU.
    # Labels > C never match any row and thus contribute 0 (PyTorch would error).
    cls = jax.lax.broadcasted_iota(jnp.int32, x.shape, 0)      # (C, TILE)
    sel = cls == safe                                           # (C, TILE) bool

    # numerically stable log-sum-exp over classes (sublane reduce -> XLU, exp/log -> EUP)
    m = jnp.max(x, axis=0, keepdims=True)                       # (1, TILE)
    lse = m + jnp.log(jnp.sum(jnp.exp(x - m), axis=0, keepdims=True))
    # masked-select "gathers" (cheaper than f32 one-hot multiply-reduce)
    x_t = jnp.sum(jnp.where(sel, x, 0.0), axis=0, keepdims=True)           # target logit
    w_t = jnp.sum(jnp.where(sel, w_ref[...], 0.0), axis=0, keepdims=True)  # target weight

    # selects, so garbage logits in a partial edge block can never leak NaNs
    lacc_ref[...] += jnp.where(valid, w_t * (lse - x_t), 0.0)
    wacc_ref[...] += jnp.where(valid, w_t, 0.0)

    @pl.when(p == last)
    def _():
        # Reduce once per (batch, split); splat across 128 lanes so the tiny HBM
        # writeback stays an unmasked, lane-dense store.
        lsum_ref[...] = jnp.full(lsum_ref.shape, jnp.sum(lacc_ref[...]), jnp.float32)
        wsum_ref[...] = jnp.full(wsum_ref.shape, jnp.sum(wacc_ref[...]), jnp.float32)


@jax.jit
def cross_entropy_loss_2d(inputs, targets, weight):
    """inputs: (N, C, H, W) float logits; targets: (N, H, W) int labels in [0, C]."""
    N, C, H, W = inputs.shape
    P = H * W

    # Free reshapes of the native NCHW layout — pixels already contiguous on the last axis.
    x = inputs.reshape(N, C, P)
    # NOTE: pass int32 (or narrower) targets; an int64 input would add a hidden
    # full-array cast pass in HBM before the kernel.
    t = targets.reshape(N, 1, P).astype(jnp.int32)
    w = jnp.asarray(weight, jnp.float32).reshape(C, 1)

    itemsize = x.dtype.itemsize
    cap = _tpu_vmem_capacity()
    # Per-generation pipeline-footprint budget: v7x has 64 MiB physical VMEM,
    # v5e/v6e have 128 MiB (default scoped limits are raised via vmem_limit_bytes).
    budget = (24 << 20) if cap <= (64 << 20) else (48 << 20)
    tile, per_px = _pick_tile(P, C, itemsize, budget)

    steps = pl.cdiv(P, tile)
    # v7x megacore: if the batch axis can't feed both TensorCores, split the pixel
    # steps across a second parallel axis (no effect on single-core v5e/v6e).
    nsplit = 2 if (N == 1 and steps >= 2 and steps % 2 == 0) else 1
    sps = steps // nsplit                     # sequential pixel steps per split

    P_pad = steps * tile
    if P_pad != P:
        # pad targets with class 0 -> ignored (cheap: int32, tiny vs logits)
        t = jnp.pad(t, ((0, 0), (0, 0), (0, P_pad - P)))
    if P < tile:
        # only in the tiny-input corner case do we pad logits (so the block never
        # exceeds the array); large inputs rely on standard partial edge blocks.
        x = jnp.pad(x, ((0, 0), (0, 0), (0, tile - P)))

    footprint = per_px * tile + 4 * C + 4 * 2 * 2 * 128
    vmem_limit = int(min(cap - (8 << 20), max(32 << 20, 2 * footprint)))

    cost = pl.CostEstimate(
        flops=int(8 * N * C * P),
        transcendentals=int(N * P * (C + 1)),
        bytes_accessed=int(N * C * P * itemsize + N * P_pad * 4
                           + 2 * N * nsplit * 128 * 4 + C * 4),
    )

    lsum, wsum = pl.pallas_call(
        _ce2d_kernel,
        out_shape=(jax.ShapeDtypeStruct((N * nsplit, 1, 128), jnp.float32),
                   jax.ShapeDtypeStruct((N * nsplit, 1, 128), jnp.float32)),
        grid_spec=pltpu.PrefetchScalarGridSpec(
            num_scalar_prefetch=0,
            grid=(N, nsplit, sps),
            in_specs=[
                pl.BlockSpec((C, 1), lambda n, s, p: (0, 0)),      # class weights (resident)
                pl.BlockSpec((1, C, tile),                          # logits tile (lane-dense)
                             lambda n, s, p: (n, 0, s * sps + p)),
                pl.BlockSpec((1, 1, tile),                          # targets tile
                             lambda n, s, p: (n, 0, s * sps + p)),
            ],
            out_specs=[
                pl.BlockSpec((1, 1, 128), lambda n, s, p: (n * nsplit + s, 0, 0)),
                pl.BlockSpec((1, 1, 128), lambda n, s, p: (n * nsplit + s, 0, 0)),
            ],
            scratch_shapes=[pltpu.VMEM((1, tile), jnp.float32),     # loss accumulator
                            pltpu.VMEM((1, tile), jnp.float32)],    # weight accumulator
        ),
        compiler_params=pltpu.CompilerParams(
            dimension_semantics=("parallel", "parallel", "arbitrary"),
            vmem_limit_bytes=vmem_limit),
        cost_estimate=cost,
    )(w, x, t)

    s = jnp.sum(lsum[:, 0, 0])
    d = jnp.sum(wsum[:, 0, 0])
    d_safe = jnp.where(d > 0, d, jnp.float32(1.0))   # NaN-safe divisor under autodiff
    loss = jnp.where(d > 0, s / d_safe, jnp.float32(0.0))
    # Module returns a list with one scalar loss tensor.
    return [loss]


def _reference(inputs, targets, weight):
    N, C, H, W = inputs.shape
    w = jnp.asarray(weight, jnp.float32)
    x = jnp.transpose(inputs, (0, 2, 3, 1)).reshape(-1, C).astype(jnp.float32)
    t = targets.reshape(-1).astype(jnp.int32) - 1
    valid = t >= 0
    safe = jnp.where(valid, t, 0)
    logp = jax.nn.log_softmax(x, axis=-1)
    nll = -jnp.take_along_axis(logp, safe[:, None], axis=-1)[:, 0]
    wt = w[safe]
    loss_all = jnp.where(valid, wt * nll, 0.0)
    div = jnp.sum(jnp.where(valid, wt, 0.0))
    return jnp.where(div > 0, jnp.sum(loss_all) / div, 0.0)


if __name__ == "__main__":
    # Deterministic synthetic setup: 4 weighted classes (class ids 1..4), class 0 = ignore.
    weight = [0.5, 1.0, 1.5, 2.0]          # len(weight) == C == inputs channel dim
    N, C, H, W = 2, 4, 16, 16

    key = jax.random.PRNGKey(0)
    k_x, k_t = jax.random.split(key)
    inputs = jax.random.normal(k_x, (N, C, H, W), dtype=jnp.float32)
    targets = jax.random.randint(k_t, (N, H, W), minval=0, maxval=C + 1, dtype=jnp.int32)

    losses = cross_entropy_loss_2d(inputs, targets, weight)
    out = jax.block_until_ready(losses[0])

    ref = jax.block_until_ready(_reference(inputs, targets, weight))
    np.testing.assert_allclose(np.asarray(out), np.asarray(ref), rtol=1e-5, atol=1e-6)

    print("KERNEL_OK")
</pallas_src>

<mosaic_0001>
module attributes {stable_mosaic.version = 11 : i64} {
  func.func @_ce2d_kernel(%arg0: i32, %arg1: i32, %arg2: i32, %arg3: memref<4x1xf32, #tpu.memory_space<vmem>>, %arg4: memref<1x4x256xf32, #tpu.memory_space<vmem>>, %arg5: memref<1x1x256xi32, #tpu.memory_space<vmem>>, %arg6: memref<1x1x128xf32, #tpu.memory_space<vmem>>, %arg7: memref<1x1x128xf32, #tpu.memory_space<vmem>>, %arg8: memref<1x256xf32, #tpu.memory_space<vmem>>, %arg9: memref<1x256xf32, #tpu.memory_space<vmem>>) attributes {dimension_semantics = [#tpu.dimension_semantics<parallel>, #tpu.dimension_semantics<parallel>, #tpu.dimension_semantics<arbitrary>], iteration_bounds = array<i64: 2, 1, 1>, scalar_prefetch = 0 : i64, scratch_operands = 2 : i64, tpu.core_type = #tpu.core_type<tc>, window_params = [{pipeline_mode = #tpu.pipeline_mode<synchronous>, transform_indices = @transform_0, window_bounds = array<i64: 4, 1>}, {transform_indices = @transform_1, window_bounds = array<i64: 1, 4, 256>}, {transform_indices = @transform_2, window_bounds = array<i64: 1, 1, 256>}, {transform_indices = @transform_3, window_bounds = array<i64: 1, 1, 128>}, {transform_indices = @transform_4, window_bounds = array<i64: 1, 1, 128>}]} {
    %c0_i32 = arith.constant 0 : i32
    %0 = arith.cmpi eq, %arg2, %c0_i32 : i32
    %1 = arith.extui %0 : i1 to i32
    %c0_i32_0 = arith.constant 0 : i32
    %2 = arith.cmpi ne, %1, %c0_i32_0 : i32
    scf.if %2 {
      %cst_27 = arith.constant 0.000000e+00 : f32
      %51 = vector.broadcast %cst_27 : f32 to vector<1x256xf32>
      %c0_28 = arith.constant 0 : index
      %c0_29 = arith.constant 0 : index
      %52 = vector.load %arg8[%c0_28, %c0_29] : memref<1x256xf32, #tpu.memory_space<vmem>>, vector<1x256xf32>
      tpu.vector_store %arg8[%c0_28, %c0_29], %51 {strides = array<i32>} : memref<1x256xf32, #tpu.memory_space<vmem>>, vector<1x256xf32>,
      %cst_30 = arith.constant 0.000000e+00 : f32
      %53 = vector.broadcast %cst_30 : f32 to vector<1x256xf32>
      %c0_31 = arith.constant 0 : index
      %c0_32 = arith.constant 0 : index
      %54 = vector.load %arg9[%c0_31, %c0_32] : memref<1x256xf32, #tpu.memory_space<vmem>>, vector<1x256xf32>
      tpu.vector_store %arg9[%c0_31, %c0_32], %53 {strides = array<i32>} : memref<1x256xf32, #tpu.memory_space<vmem>>, vector<1x256xf32>,
    } else {
    }
    %c0 = arith.constant 0 : index
    %c0_1 = arith.constant 0 : index
    %c0_2 = arith.constant 0 : index
    %3 = vector.load %arg4[%c0, %c0_1, %c0_2] : memref<1x4x256xf32, #tpu.memory_space<vmem>>, vector<1x4x256xf32>
    %4 = vector.shape_cast %3 : vector<1x4x256xf32> to vector<4x256xf32>
    %c0_3 = arith.constant 0 : index
    %c0_4 = arith.constant 0 : index
    %c0_5 = arith.constant 0 : index
    %5 = vector.load %arg5[%c0_3, %c0_4, %c0_5] : memref<1x1x256xi32, #tpu.memory_space<vmem>>, vector<1x1x256xi32>
    %6 = vector.shape_cast %5 : vector<1x1x256xi32> to vector<1x256xi32>
    %c1_i32 = arith.constant 1 : i32
    %7 = vector.broadcast %c1_i32 : i32 to vector<1x256xi32>
    %8 = arith.subi %6, %7 : vector<1x256xi32>
    %c0_i32_6 = arith.constant 0 : i32
    %9 = vector.broadcast %c0_i32_6 : i32 to vector<1x256xi32>
    %10 = arith.cmpi sge, %8, %9 : vector<1x256xi32>
    %c0_i32_7 = arith.constant 0 : i32
    %11 = vector.broadcast %c0_i32_7 : i32 to vector<1x256xi32>
    %12 = arith.select %10, %8, %11 : vector<1x256xi1>, vector<1x256xi32>
    %13 = tpu.iota {dimensions = array<i32: 0>} : vector<4x256xi32>
    %14 = vector.broadcast %12 : vector<1x256xi32> to vector<4x256xi32>
    %15 = arith.cmpi eq, %13, %14 : vector<4x256xi32>
    %cst = arith.constant dense<0xFF800000> : vector<256xf32>
    %16 = vector.multi_reduction <maximumf>, %4, %cst [0] : vector<4x256xf32> to vector<256xf32>
    %17 = vector.shape_cast %16 : vector<256xf32> to vector<1x256xf32>
    %18 = vector.broadcast %17 : vector<1x256xf32> to vector<4x256xf32>
    %19 = arith.subf %4, %18 : vector<4x256xf32>
    %20 = math.exp %19 : vector<4x256xf32>
    %cst_8 = arith.constant dense<0.000000e+00> : vector<256xf32>
    %21 = vector.multi_reduction <add>, %20, %cst_8 [0] : vector<4x256xf32> to vector<256xf32>
    %22 = vector.shape_cast %21 : vector<256xf32> to vector<1x256xf32>
    %23 = math.log %22 : vector<1x256xf32>
    %24 = arith.addf %17, %23 : vector<1x256xf32>
    %cst_9 = arith.constant 0.000000e+00 : f32
    %25 = vector.broadcast %cst_9 : f32 to vector<4x256xf32>
    %26 = arith.select %15, %4, %25 : vector<4x256xi1>, vector<4x256xf32>
    %cst_10 = arith.constant dense<0.000000e+00> : vector<256xf32>
    %27 = vector.multi_reduction <add>, %26, %cst_10 [0] : vector<4x256xf32> to vector<256xf32>
    %28 = vector.shape_cast %27 : vector<256xf32> to vector<1x256xf32>
    %c0_11 = arith.constant 0 : index
    %c0_12 = arith.constant 0 : index
    %29 = vector.load %arg3[%c0_11, %c0_12] : memref<4x1xf32, #tpu.memory_space<vmem>>, vector<4x1xf32>
    %cst_13 = arith.constant 0.000000e+00 : f32
    %30 = vector.shape_cast %29 : vector<4x1xf32> to vector<4x1xf32>
    %31 = vector.broadcast %30 : vector<4x1xf32> to vector<4x256xf32>
    %32 = vector.broadcast %cst_13 : f32 to vector<4x256xf32>
    %33 = arith.select %15, %31, %32 : vector<4x256xi1>, vector<4x256xf32>
    %cst_14 = arith.constant dense<0.000000e+00> : vector<256xf32>
    %34 = vector.multi_reduction <add>, %33, %cst_14 [0] : vector<4x256xf32> to vector<256xf32>
    %35 = vector.shape_cast %34 : vector<256xf32> to vector<1x256xf32>
    %c0_15 = arith.constant 0 : index
    %c0_16 = arith.constant 0 : index
    %36 = vector.load %arg8[%c0_15, %c0_16] : memref<1x256xf32, #tpu.memory_space<vmem>>, vector<1x256xf32>
    %37 = arith.subf %24, %28 : vector<1x256xf32>
    %38 = arith.mulf %35, %37 : vector<1x256xf32>
    %cst_17 = arith.constant 0.000000e+00 : f32
    %39 = vector.broadcast %cst_17 : f32 to vector<1x256xf32>
    %40 = arith.select %10, %38, %39 : vector<1x256xi1>, vector<1x256xf32>
    %41 = arith.addf %36, %40 : vector<1x256xf32>
    %c0_18 = arith.constant 0 : index
    %c0_19 = arith.constant 0 : index
    %42 = vector.load %arg8[%c0_18, %c0_19] : memref<1x256xf32, #tpu.memory_space<vmem>>, vector<1x256xf32>
    tpu.vector_store %arg8[%c0_18, %c0_19], %41 {strides = array<i32>} : memref<1x256xf32, #tpu.memory_space<vmem>>, vector<1x256xf32>,
    %c0_20 = arith.constant 0 : index
    %c0_21 = arith.constant 0 : index
    %43 = vector.load %arg9[%c0_20, %c0_21] : memref<1x256xf32, #tpu.memory_space<vmem>>, vector<1x256xf32>
    %cst_22 = arith.constant 0.000000e+00 : f32
    %44 = vector.broadcast %cst_22 : f32 to vector<1x256xf32>
    %45 = arith.select %10, %35, %44 : vector<1x256xi1>, vector<1x256xf32>
    %46 = arith.addf %43, %45 : vector<1x256xf32>
    %c0_23 = arith.constant 0 : index
    %c0_24 = arith.constant 0 : index
    %47 = vector.load %arg9[%c0_23, %c0_24] : memref<1x256xf32, #tpu.memory_space<vmem>>, vector<1x256xf32>
    tpu.vector_store %arg9[%c0_23, %c0_24], %46 {strides = array<i32>} : memref<1x256xf32, #tpu.memory_space<vmem>>, vector<1x256xf32>,
    %c0_i32_25 = arith.constant 0 : i32
    %48 = arith.cmpi eq, %arg2, %c0_i32_25 : i32
    %49 = arith.extui %48 : i1 to i32
    %c0_i32_26 = arith.constant 0 : i32
    %50 = arith.cmpi ne, %49, %c0_i32_26 : i32
    scf.if %50 {
      %c0_27 = arith.constant 0 : index
      %c0_28 = arith.constant 0 : index
      %51 = vector.load %arg8[%c0_27, %c0_28] : memref<1x256xf32, #tpu.memory_space<vmem>>, vector<1x256xf32>
      %52 = vector.shape_cast %51 : vector<1x256xf32> to vector<1x1x256xf32>
      %cst_29 = arith.constant dense<0.000000e+00> : vector<1xf32>
      %53 = vector.multi_reduction <add>, %52, %cst_29 [1, 2] : vector<1x1x256xf32> to vector<1xf32>
      %54 = vector.shape_cast %53 : vector<1xf32> to vector<1x1x1xf32>
      %55 = vector.extract %54[0, 0, 0] : f32 from vector<1x1x1xf32>
      %56 = vector.broadcast %55 : f32 to vector<1x1x128xf32>
      %c0_30 = arith.constant 0 : index
      %c0_31 = arith.constant 0 : index
      %c0_32 = arith.constant 0 : index
      %57 = vector.load %arg6[%c0_30, %c0_31, %c0_32] : memref<1x1x128xf32, #tpu.memory_space<vmem>>, vector<1x1x128xf32>
      tpu.vector_store %arg6[%c0_30, %c0_31, %c0_32], %56 {strides = array<i32>} : memref<1x1x128xf32, #tpu.memory_space<vmem>>, vector<1x1x128xf32>,
      %c0_33 = arith.constant 0 : index
      %c0_34 = arith.constant 0 : index
      %58 = vector.load %arg9[%c0_33, %c0_34] : memref<1x256xf32, #tpu.memory_space<vmem>>, vector<1x256xf32>
      %59 = vector.shape_cast %58 : vector<1x256xf32> to vector<1x1x256xf32>
      %cst_35 = arith.constant dense<0.000000e+00> : vector<1xf32>
      %60 = vector.multi_reduction <add>, %59, %cst_35 [1, 2] : vector<1x1x256xf32> to vector<1xf32>
      %61 = vector.shape_cast %60 : vector<1xf32> to vector<1x1x1xf32>
      %62 = vector.extract %61[0, 0, 0] : f32 from vector<1x1x1xf32>
      %63 = vector.broadcast %62 : f32 to vector<1x1x128xf32>
      %c0_36 = arith.constant 0 : index
      %c0_37 = arith.constant 0 : index
      %c0_38 = arith.constant 0 : index
      %64 = vector.load %arg7[%c0_36, %c0_37, %c0_38] : memref<1x1x128xf32, #tpu.memory_space<vmem>>, vector<1x1x128xf32>
      tpu.vector_store %arg7[%c0_36, %c0_37, %c0_38], %63 {strides = array<i32>} : memref<1x1x128xf32, #tpu.memory_space<vmem>>, vector<1x1x128xf32>,
    } else {
    }
    return
  }
  func.func @transform_0(%arg0: i32, %arg1: i32, %arg2: i32) -> (i32, i32) {
    %c0_i32 = arith.constant 0 : i32
    %c0_i32_0 = arith.constant 0 : i32
    %c0_i32_1 = arith.constant 0 : i32
    return %c0_i32, %c0_i32_0 : i32, i32
  }
  func.func @transform_1(%arg0: i32, %arg1: i32, %arg2: i32) -> (i32, i32, i32) {
    %c1_i32 = arith.constant 1 : i32
    %0 = arith.muli %arg1, %c1_i32 : i32
    %1 = arith.addi %0, %arg2 : i32
    %c0_i32 = arith.constant 0 : i32
    %c0_i32_0 = arith.constant 0 : i32
    return %arg0, %c0_i32, %1 : i32, i32, i32
  }
  func.func @transform_2(%arg0: i32, %arg1: i32, %arg2: i32) -> (i32, i32, i32) {
    %c1_i32 = arith.constant 1 : i32
    %0 = arith.muli %arg1, %c1_i32 : i32
    %1 = arith.addi %0, %arg2 : i32
    %c0_i32 = arith.constant 0 : i32
    %c0_i32_0 = arith.constant 0 : i32
    return %arg0, %c0_i32, %1 : i32, i32, i32
  }
  func.func @transform_3(%arg0: i32, %arg1: i32, %arg2: i32) -> (i32, i32, i32) {
    %c1_i32 = arith.constant 1 : i32
    %0 = arith.muli %arg0, %c1_i32 : i32
    %1 = arith.addi %0, %arg1 : i32
    %c0_i32 = arith.constant 0 : i32
    %c0_i32_0 = arith.constant 0 : i32
    %c0_i32_1 = arith.constant 0 : i32
    return %1, %c0_i32, %c0_i32_0 : i32, i32, i32
  }
  func.func @transform_4(%arg0: i32, %arg1: i32, %arg2: i32) -> (i32, i32, i32) {
    %c1_i32 = arith.constant 1 : i32
    %0 = arith.muli %arg0, %c1_i32 : i32
    %1 = arith.addi %0, %arg1 : i32
    %c0_i32 = arith.constant 0 : i32
    %c0_i32_0 = arith.constant 0 : i32
    %c0_i32_1 = arith.constant 0 : i32
    return %1, %c0_i32, %c0_i32_0 : i32, i32, i32
  }
}

</mosaic_0001>

<bundles_post_ra>
// kernel: cross_entropy_loss_2d.1
= control target key start
LH: loop header
LB: loop body
LE: loop exit
PB: predicated region body
PF: predicated region fallthrough
CT: control target
= control target key end

     0   :  { %s695_s15 = smov 0   ;;  %s697_s16 = smov 0   ;;  %s804_s0 = inlined_call_operand.vmem [shape: f32[4,1], index: 0, kind: input, shape index: {}]   ;;  %s805_s1 = inlined_call_operand.vmem [shape: f32[2,4,256], index: 1, kind: input, shape index: {}]   ;;  %s806_s2 = inlined_call_operand.vmem [shape: s32[2,1,256], index: 2, kind: input, shape index: {}]   ;;  %s807_s3 = inlined_call_operand.vmem [shape: f32[2,1,128], index: 3, kind: output, shape index: {0}]   ;;  %s808_s4 = inlined_call_operand.vmem [shape: f32[2,1,128], index: 4, kind: output, shape index: {1}]  }
   0x1   :  { %s699_s17 = smov 0  }
   0x2 LB: > { %s34_s18 = sadd.s32 1, %s662_s16  ;;  %p599_p0 = scmp.ge.s32.totalorder %s666_s17, 1  ;;  %s666_s17 = sphi %s699_s17, %s15_s17   ;;  %s662_s16 = sphi %s697_s16, %s816_s16   ;;  %s658_s15 = sphi %s695_s15, %s815_s15  }
   0x3   : > { %p36_p1 = scmp.ge.s32.totalorder %s34_s18, 2  ;;  %p219_p2 = scmp.lt.s32.totalorder %s666_s17, 3 }
   0x5   : > { %s818_s18 = smov (%p36_p1, %s34_s18), 0  ;;  %p220_p3 = pnand %p599_p0, %p219_p2 }
   0x6   : > { %p264_p4 = scmp.lt.s32.totalorder (!%p220_p3), %s658_s15, 1 }
   0x7   : > { %223 = sbr.rel (%p220_p3) target bundleno = 345 (0x159), region = 32 }
   0xc   : > { %v392_v0 = vld [vmem:[%s804_s0] sm:$0xf]  ;;  %v668_v1 = vmov 0   ;;  %s820_s15 = smov (!%p264_p4, %s658_s15), 1  ;;  %vm322_vm0 = vcmask 1043456   ;;  %v299_v28 = vlaneseq  ;;  %v669_v31 = vmov 0.0  }
   0xd   : > { %637 = vset.pattern.permute.xlu0 %v668_v1  ;;  %s606_s21 = sshll.u32 %s820_s15, 3  ;;  %s602_s25 = sshll.u32 %s820_s15, 1  ;;  %vm422_vm5 = vcmask 1040384  }
   0xe   : > { %395 = vperm.xlu0 %637, %v392_v0   ;;  %s271_s24 = scalar_lea.vmem %s805_s1, %s606_s21  ;;  %s282_s28 = scalar_lea.vmem %s806_s2, %s602_s25  ;;  %vm738_vm1 = vcmp.lt.s32.totalorder %v299_v28, 256  ;;  %v311_v36 = vshrl.u32 %v299_v28, 7 }
   0xf   : > { %v305_v2 = vld [vmem:[%s271_s24] sm:$0xff]  ;;  %303 = vst.msk [vmem:[#allocation2] sm:$0x3] %vm738_vm1, %v669_v31  ;;  %s288_s5 = scalar_lea.vmem %s807_s3, %s820_s15  ;;  %s293_s9 = scalar_lea.vmem %s808_s4, %s820_s15 }
  0x10   : > { %317 = vst [vmem:[#allocation1] ss:$2 sm:$0xff] %v305_v2  ;;  %v306_v26 = vld [vmem:[%s282_s28] sm:$0x3] }
  0x11   : > { %v735_v27 = vadd.s32 4294967295, %v306_v26  ;;  %304 = vst.msk [vmem:[#allocation3] sm:$0x3] %vm738_vm1, %v669_v31 }
  0x13   : > { %vm308_vm2 = vcmp.ge.s32.totalorder %v735_v27, 0 }
  0x14   : > { %v309_v34 = vsel %vm308_vm2, %v735_v27, 0 }
  0x15   : > { %v313_v37 = vperm.slane %v309_v34, 1  ;;  %v312_v39 = vperm.slane %v309_v34, 0 }
  0x17   : > { %v319_v3 = vld.sshfl [vmem:[#allocation1 + $0x8] sm:$0xff pattern:$0x75316420]  ;;  %v318_v5 = vld.sshfl [vmem:[#allocation1] sm:$0xff pattern:$0x75316420]  ;;  %vm751_vm3 = vcmp.eq.s32.totalorder %v311_v36, %v313_v37  ;;  %vm755_vm4 = vcmp.eq.s32.totalorder %v311_v36, %v312_v39 }
  0x18   : > { %v330_v4 = vsel %vm322_vm0, %v319_v3, -inf  ;;  %v323_v7 = vsel %vm322_vm0, %v318_v5, -inf  ;;  %v432_v36 = vld [vmem:[#allocation3] sm:$0x3]  ;;  %v414_v39 = vld [vmem:[#allocation2] sm:$0x3] }
  0x19   : > { %v331_v6 = vrot.slane %v330_v4, 4  ;;  %v324_v8 = vrot.slane %v323_v7, 4 }
  0x1b   : > { %v332_v9 = vmax.f32 %v330_v4, %v331_v6  ;;  %v325_v10 = vmax.f32 %v323_v7, %v324_v8 }
  0x1d   : > { %v333_v11 = vrot.slane %v332_v9, 2  ;;  %v326_v12 = vrot.slane %v325_v10, 2 }
  0x1f   : > { %v334_v13 = vmax.f32 %v332_v9, %v333_v11  ;;  %v327_v14 = vmax.f32 %v325_v10, %v326_v12 }
  0x21   : > { %v335_v15 = vrot.slane %v334_v13, 1  ;;  %v328_v16 = vrot.slane %v327_v14, 1 }
  0x23   : > { %v724_v17 = vmax.f32 %v334_v13, %v335_v15  ;;  %v726_v18 = vmax.f32 %v327_v14, %v328_v16 }
  0x25   : > { %v339_v19 = vrot.slane %v724_v17, 4 }
  0x27   : > { %v340_v20 = vsel %vm322_vm0, %v726_v18, %v339_v19 }
  0x28   : > { %v342_v21 = vsub.f32 %v305_v2, %v340_v20 }
  0x2a   : > { %v343_v22 = vmul.f32 1.442695, %v342_v21 }
  0x2c   : > { %638 = vpow2.f32 %v343_v22 }
  0x32   : > { %v639_v23 = vpop.eup %638 }
  0x33   : > { %346 = vst [vmem:[#allocation1] ss:$2 sm:$0xff] %v639_v23 }
  0x3a   : > { %v347_v24 = vld.sshfl [vmem:[#allocation1] sm:$0xff pattern:$0x75316420]  ;;  %v348_v25 = vld.sshfl [vmem:[#allocation1 + $0x8] sm:$0xff pattern:$0x75316420] }
  0x3b   : > { %371 = vst [vmem:[#allocation1] ss:$2 sm:$0xff] %v305_v2  ;;  %v358_v29 = vsel %vm322_vm0, %v348_v25, 0.0  ;;  %v351_v32 = vsel %vm322_vm0, %v347_v24, 0.0 }
  0x3c   : > { %v359_v33 = vrot.slane %v358_v29, 4  ;;  %v352_v35 = vrot.slane %v351_v32, 4 }
  0x3e   : > { %v360_v38 = vadd.f32 %v359_v33, %v358_v29  ;;  %v353_v40 = vadd.f32 %v352_v35, %v351_v32 }
  0x40   : > { %v361_v42 = vrot.slane %v360_v38, 2  ;;  %v354_v45 = vrot.slane %v353_v40, 2 }
  0x42   : > { %v373_v43 = vld.sshfl [vmem:[#allocation1 + $0x8] sm:$0xff pattern:$0x75316420]  ;;  %v372_v46 = vld.sshfl [vmem:[#allocation1] sm:$0xff pattern:$0x75316420]  ;;  %v362_v48 = vadd.f32 %v361_v42, %v360_v38  ;;  %v355_v50 = vadd.f32 %v354_v45, %v353_v40 }
  0x43   : > { %v377_v47 = vsel %vm751_vm3, %v373_v43, 0.0  ;;  %v376_v49 = vsel %vm755_vm4, %v372_v46, 0.0 }
  0x44   : > { %v385_v51 = vsel %vm322_vm0, %v377_v47, 0.0  ;;  %v363_v52 = vrot.slane %v362_v48, 1  ;;  %v378_v53 = vsel %vm322_vm0, %v376_v49, 0.0  ;;  %v356_v55 = vrot.slane %v355_v50, 1 }
  0x45   : > { %v386_v54 = vrot.slane %v385_v51, 4  ;;  %v379_v56 = vrot.slane %v378_v53, 4 }
  0x46   : > { %v364_v57 = vadd.f32 %v363_v52, %v362_v48  ;;  %v357_v59 = vadd.f32 %v356_v55, %v355_v50 }
  0x47   : > { %v387_v58 = vadd.f32 %v386_v54, %v385_v51  ;;  %v380_v60 = vadd.f32 %v379_v56, %v378_v53 }
  0x48   : > { %640 = vlog2.f32 %v364_v57 }
  0x49   : > { %v388_v61 = vrot.slane %v387_v58, 2  ;;  %642 = vlog2.f32 %v357_v59  ;;  %v381_v62 = vrot.slane %v380_v60, 2 }
  0x4b   : > { %v389_v63 = vadd.f32 %v388_v61, %v387_v58  ;;  %v382_v2 = vadd.f32 %v381_v62, %v380_v60 }
  0x4d   : > { %v390_v9 = vrot.slane %v389_v63, 1  ;;  %v383_v13 = vrot.slane %v382_v2, 1 }
  0x4e   : > { %v641_v0 = vpop.eup %640 }
  0x4f   : > { %v643_v5 = vpop.eup %642  ;;  %v368_v8 = vmul.f32 0.6931472, %v641_v0  ;;  %v391_v19 = vadd.f32 %v390_v9, %v389_v63  ;;  %v384_v23 = vadd.f32 %v383_v13, %v382_v2 }
  0x50   : > { %v366_v12 = vmul.f32 0.6931472, %v643_v5 }
  0x51   : > { %v370_v16 = vadd.f32 %v368_v8, %v724_v17 }
  0x52   : > { %v369_v22 = vadd.f32 %v366_v12, %v726_v18 }
  0x53   : > { %v416_v29 = vsub.f32 %v370_v16, %v391_v19 }
  0x54   : > { %v415_v33 = vsub.f32 %v369_v22, %v384_v23 }
  0x80   : > { %v396_v1 = vpop.permute.xlu0 %395 }
  0x81   : > { %v398_v3 = vsel %vm755_vm4, %v396_v1, 0.0  ;;  %v399_v4 = vsel %vm751_vm3, %v396_v1, 0.0 }
  0x82   : > { %v400_v6 = vsel %vm322_vm0, %v398_v3, 0.0  ;;  %v407_v7 = vsel %vm322_vm0, %v399_v4, 0.0 }
  0x83   : > { %v401_v10 = vrot.slane %v400_v6, 4  ;;  %v408_v11 = vrot.slane %v407_v7, 4 }
  0x85   : > { %v402_v14 = vadd.f32 %v401_v10, %v400_v6  ;;  %v409_v15 = vadd.f32 %v408_v11, %v407_v7 }
  0x87   : > { %v403_v20 = vrot.slane %v402_v14, 2  ;;  %v410_v21 = vrot.slane %v409_v15, 2 }
  0x89   : > { %v404_v24 = vadd.f32 %v403_v20, %v402_v14  ;;  %v411_v25 = vadd.f32 %v410_v21, %v409_v15 }
  0x8b   : > { %v405_v26 = vrot.slane %v404_v24, 1  ;;  %v412_v28 = vrot.slane %v411_v25, 1 }
  0x8d   : > { %v406_v31 = vadd.f32 %v405_v26, %v404_v24  ;;  %v413_v32 = vadd.f32 %v412_v28, %v411_v25 }
  0x8f   : > { %v418_v34 = vmul.f32 %v416_v29, %v413_v32  ;;  %v435_v35 = vrot.slane %v413_v32, 7  ;;  %v417_v37 = vmul.f32 %v415_v33, %v406_v31 }
  0x91   : > { %v421_v17 = vrot.slane %v418_v34, 7  ;;  %v436_v38 = vsel %vm422_vm5, %v406_v31, %v435_v35 }
  0x92   : > { %v438_v18 = vsel %vm308_vm2, %v436_v38, 0.0 }
  0x93   : > { %v439_v40 = vadd.f32 %v438_v18, %v432_v36  ;;  %v423_v41 = vsel %vm422_vm5, %v417_v37, %v421_v17 }
  0x94   : > { %v425_v42 = vsel %vm308_vm2, %v423_v41, 0.0 }
  0x95   : > { %440 = vst.msk [vmem:[#allocation3] sm:$0x3] %vm738_vm1, %v439_v40  ;;  %v426_v43 = vadd.f32 %v425_v42, %v414_v39 }
  0x97   : > { %431 = vst.msk [vmem:[#allocation2] sm:$0x3] %vm738_vm1, %v426_v43 }
  0x9c   : > { %v464_v44 = vld [vmem:[#allocation3] sm:$0x3] }
  0x9d   : > { %v466_v45 = vperm.slane %v464_v44, 0  ;;  %v467_v46 = vperm.slane %v464_v44, 1 }
  0x9e   : > { %v444_v47 = vld [vmem:[#allocation2] sm:$0x3] }
  0x9f   : > { %v470_v48 = vsel %vm422_vm5, %v466_v45, 0.0  ;;  %v471_v49 = vsel %vm422_vm5, %v467_v46, 0.0  ;;  %v446_v50 = vperm.slane %v444_v47, 0  ;;  %v447_v51 = vperm.slane %v444_v47, 1 }
  0xa0   : > { %v472_v52 = vadd.f32 %v471_v49, %v470_v48 }
  0xa1   : > { %v450_v27 = vsel %vm422_vm5, %v446_v50, 0.0  ;;  %v451_v53 = vsel %vm422_vm5, %v447_v51, 0.0 }
  0xa2   : > { %473 = vadd.xlane.f32.xlu1 %v472_v52  ;;  %v452_v54 = vadd.f32 %v451_v53, %v450_v27 }
  0xa4   : > { %453 = vadd.xlane.f32.xlu0 %v452_v54 }
 0x115   : > { %v474_v30 = vpop.xlane.xlu1 %473 }
 0x116   : > { %v475_v55 = vrot.slane %v474_v30, 4 }
 0x117   : > { %v454_v56 = vpop.xlane.xlu0 %453 }
 0x118   : > { %v476_v57 = vadd.f32 %v475_v55, %v474_v30  ;;  %v455_v58 = vrot.slane %v454_v56, 4 }
 0x11a   : > { %v477_v59 = vrot.slane %v476_v57, 2  ;;  %v456_v60 = vadd.f32 %v455_v58, %v454_v56 }
 0x11c   : > { %v478_v61 = vadd.f32 %v477_v59, %v476_v57  ;;  %v457_v62 = vrot.slane %v456_v60, 2 }
 0x11e   : > { %v458_v63 = vadd.f32 %v457_v62, %v456_v60  ;;  %v479_v0 = vrot.slane %v478_v61, 1 }
 0x120   : > { %v459_v1 = vrot.slane %v458_v63, 1  ;;  %v480_v3 = vadd.f32 %v479_v0, %v478_v61 }
 0x122   : > { %v460_v2 = vadd.f32 %v459_v1, %v458_v63 }
 0x124   : > { %607 = vpush %v460_v2 }
 0x125   : > { %609 = vpush %v480_v3 }
 0x155   : > { %s608_s6 = spop %607 }
 0x156   : > { %v462_v4 = vstv %s608_s6  ;;  %s610_s10 = spop %609 }
 0x157   : > { %463 = vst [vmem:[%s288_s5] sm:$0x1] %v462_v4  ;;  %v482_v5 = vstv %s610_s10 }
 0x158   : > { %483 = vst [vmem:[%s293_s9] sm:$0x1] %v482_v5 }
 0x159 PF: > { %s15_s17 = sadd.s32 1, %s666_s17   ;;  %s815_s15 = smov %s662_s16 }
 0x15a   : > { %p12_p5 = scmp.ge.s32.totalorder %s15_s17, 4   ;;  %s816_s16 = smov %s818_s18 }
 0x15c   :  { %14 = sbr.rel (!%p12_p5) target bundleno = 2 (0x2), region = 85 }

</bundles_post_ra>
